<compile_context>
chip_gen: v6e
topology: v6e:2x2x1
jax: 0.10.0
libtpu: 0.0.40
codegen_flags: <defaults>
</compile_context>

<pallas_src>
import jax
import jax.numpy as jnp
from jax.experimental import pallas as pl
from jax.experimental.pallas import tpu as pltpu

LANE = 128


def _swish_kernel(sp_ref, x_ref, o_ref):
    # sp_ref: (1,1) softplus(beta) scalar in SMEM (precomputed in the wrapper).
    # x_ref / o_ref: (block_rows, 128) VMEM tiles.
    sp_beta = sp_ref[0, 0]
    x = x_ref[...].astype(jnp.float32)           # keep math in f32 (VPU/EUP safe)
    y = x * jax.nn.sigmoid(x * sp_beta)          # sigmoid -> EUP, mul -> VPU
    o_ref[...] = y.astype(o_ref.dtype)           # explicit downcast on store


def _sublane_multiple(dtype):
    # f32 -> 8, bf16/f16 -> 16, int8/fp8 -> 32 (sub-32-bit dtypes pack along sublanes)
    itemsize = jnp.dtype(dtype).itemsize
    return max(8, 32 // max(itemsize, 1))


def swish(x, beta, *, block_rows=2048):
    """x: any-shape float array (NCHW in the demo). beta: scalar float."""
    orig_shape = x.shape
    orig_dtype = x.dtype
    total = x.size

    # Flatten to a lane-dense 2D slab (rows, 128). Only pad the (at most 127)
    # trailing elements needed to make the flat length a multiple of 128.
    x_flat = jnp.reshape(x, (-1,))
    rem = total % LANE
    if rem != 0:
        x_flat = jnp.pad(x_flat, (0, LANE - rem))
    rows = x_flat.size // LANE
    x2d = jnp.reshape(x_flat, (rows, LANE))

    # Block rows: either the full extent (always a legal block shape) or a large
    # multiple of the dtype's sublane packing; the ragged last block is masked
    # automatically by Pallas.
    sub = _sublane_multiple(orig_dtype)
    if rows <= block_rows:
        br = rows
    else:
        br = max(sub, (block_rows // sub) * sub)
    grid = (pl.cdiv(rows, br),)

    # softplus(beta) computed once, stably, outside the kernel.
    sp_beta = jax.nn.softplus(jnp.asarray(beta, dtype=jnp.float32)).reshape(1, 1)

    bytes_accessed = 2 * x2d.size * jnp.dtype(orig_dtype).itemsize  # read + write
    out2d = pl.pallas_call(
        _swish_kernel,
        out_shape=jax.ShapeDtypeStruct((rows, LANE), orig_dtype),
        grid=grid,
        in_specs=[
            pl.BlockSpec(memory_space=pltpu.MemorySpace.SMEM),  # softplus(beta)
            pl.BlockSpec((br, LANE), lambda i: (i, 0)),         # x tile
        ],
        out_specs=pl.BlockSpec((br, LANE), lambda i: (i, 0)),
        compiler_params=pltpu.CompilerParams(
            dimension_semantics=("parallel",)),
        cost_estimate=pl.CostEstimate(
            flops=5 * total, transcendentals=total, bytes_accessed=bytes_accessed),
    )(sp_beta, x2d)

    out_flat = jnp.reshape(out2d, (-1,))
    if rem != 0:
        out_flat = out_flat[:total]
    return jnp.reshape(out_flat, orig_shape)


if __name__ == "__main__":
    key = jax.random.PRNGKey(0)
    # NCHW input, small shapes (batch=2, channels=4, spatial=16x16)
    x = jax.random.normal(key, (2, 4, 16, 16), dtype=jnp.float32)
    beta = 0.5  # deterministic init, matches Swish(beta=0.5)

    y = swish(x, beta)
    y = jax.block_until_ready(y)

    # reference in plain JAX to sanity-check semantics
    sp = jax.nn.softplus(jnp.float32(beta))
    y_ref = x * jax.nn.sigmoid(x * sp)
    assert y.shape == x.shape and y.dtype == x.dtype
    assert jnp.max(jnp.abs(y - y_ref)) < 1e-6

    print("KERNEL_OK")
</pallas_src>

<mosaic_0001>
module attributes {stable_mosaic.version = 11 : i64} {
  func.func @_swish_kernel(%arg0: i32, %arg1: memref<1x1xf32, #tpu.memory_space<smem>>, %arg2: memref<16x128xf32, #tpu.memory_space<vmem>>, %arg3: memref<16x128xf32, #tpu.memory_space<vmem>>) attributes {dimension_semantics = [#tpu.dimension_semantics<parallel>], iteration_bounds = array<i64: 1>, scalar_prefetch = 0 : i64, scratch_operands = 0 : i64, tpu.core_type = #tpu.core_type<tc>, window_params = [{transform_indices = @transform_0, window_bounds = array<i64: 1, 1>}, {transform_indices = @transform_1, window_bounds = array<i64: 16, 128>}, {transform_indices = @transform_2, window_bounds = array<i64: 16, 128>}]} {
    %c0 = arith.constant 0 : index
    %c0_0 = arith.constant 0 : index
    %0 = memref.load %arg1[%c0, %c0_0] : memref<1x1xf32, #tpu.memory_space<smem>>
    %c0_1 = arith.constant 0 : index
    %c0_2 = arith.constant 0 : index
    %1 = vector.load %arg2[%c0_1, %c0_2] : memref<16x128xf32, #tpu.memory_space<vmem>>, vector<16x128xf32>
    %2 = vector.broadcast %0 : f32 to vector<16x128xf32>
    %3 = arith.mulf %1, %2 : vector<16x128xf32>
    %4 = arith.negf %3 : vector<16x128xf32>
    %5 = math.exp %4 : vector<16x128xf32>
    %cst = arith.constant 1.000000e+00 : f32
    %6 = vector.broadcast %cst : f32 to vector<16x128xf32>
    %7 = arith.addf %6, %5 : vector<16x128xf32>
    %8 = arith.divf %6, %7 : vector<16x128xf32>
    %9 = arith.mulf %1, %8 : vector<16x128xf32>
    %c0_3 = arith.constant 0 : index
    %c0_4 = arith.constant 0 : index
    %10 = vector.load %arg3[%c0_3, %c0_4] : memref<16x128xf32, #tpu.memory_space<vmem>>, vector<16x128xf32>
    tpu.vector_store %arg3[%c0_3, %c0_4], %9 {strides = array<i32>} : memref<16x128xf32, #tpu.memory_space<vmem>>, vector<16x128xf32>,
    return
  }
  func.func @transform_0(%arg0: i32) -> (i32, i32) {
    %c0_i32 = arith.constant 0 : i32
    %c0_i32_0 = arith.constant 0 : i32
    %c0_i32_1 = arith.constant 0 : i32
    return %c0_i32, %c0_i32_0 : i32, i32
  }
  func.func @transform_1(%arg0: i32) -> (i32, i32) {
    %c0_i32 = arith.constant 0 : i32
    %c0_i32_0 = arith.constant 0 : i32
    return %arg0, %c0_i32 : i32, i32
  }
  func.func @transform_2(%arg0: i32) -> (i32, i32) {
    %c0_i32 = arith.constant 0 : i32
    %c0_i32_0 = arith.constant 0 : i32
    return %arg0, %c0_i32 : i32, i32
  }
}

</mosaic_0001>

<bundles_post_ra>
// kernel: tpu_custom_call.1
= control target key start
LH: loop header
LB: loop body
LE: loop exit
PB: predicated region body
PF: predicated region fallthrough
CT: control target
= control target key end

     0   :  { %8 = vsyncpa [#allocation4], 0  ;;  %s158_s0 = inlined_call_operand.<no memory space> [shape: f32[1,1], index: 0, kind: input, shape index: {}]   ;;  %s159_s1 = inlined_call_operand.hbm [shape: f32[16,128], index: 1, kind: input, shape index: {}]   ;;  %s160_s2 = inlined_call_operand.hbm [shape: f32[16,128], index: 2, kind: output, shape index: {}]  }
   0x1   :  { %9 = vsyncpa [#allocation5], 0  ;;  %s124_s9 = smov [#allocation3]  }
   0x2   :  { %s17_s10 = sshll.u32 %s124_s9, 4  ;;  %s18_s10 = int_to_ptr.vmem [resolvable:$true] %s17_s10 }
   0x3   :  { %s88_s11 = scalar_lea.vmem %s18_s10, 256  ;;  %p93_p1 = scmp.lt.s32.totalorder %s18_s10, %s18_s10 }
   0x4   :  { %p89_p0 = scmp.ne.s32.totalorder %s18_s10, %s88_s11  ;;  %p94_p2 = scmp.lt.s32.totalorder %s88_s11, %s88_s11 }
   0x6   :  { %p95_p3 = por %p94_p2, %p93_p1 }
   0x8   :  { %p96_p4 = pnand %p95_p3, %p89_p0 }
   0xa   :  { %99 = shalt.err (!%p96_p4)
}
   0xb   :  { %s125_s12 = smov 128   ;;  %s126_s13 = smov 8  }
   0xc   :  { %23 = dma.hbm_to_vmem [thread:$0]  %s159_s1, 256, %s18_s10, [#allocation4], %s125_s12, %s125_s12, %s126_s13  }
   0xd   :  { %120 = dma.done.wait [#allocation4], 256  }
   0xe   :  { %121 = vsyncadd [#allocation4], 4294967040  ;;  %v30_v0 = vstv %s158_s0  ;;  %v28_v1 = vld [vmem:[#allocation3] sm:$0xff]  ;;  %v29_v2 = vld [vmem:[#allocation3 + $0x8] sm:$0xff]  ;;  %s127_s1 = smov [#allocation6]  }
   0xf   :  { %v31_v3 = vmul.f32 %v30_v0, %v28_v1  ;;  %v32_v4 = vmul.f32 %v30_v0, %v29_v2  ;;  %s54_s18 = sshll.u32 %s127_s1, 4  ;;  %s55_s18 = int_to_ptr.vmem [resolvable:$true] %s54_s18 }
  0x10   :  { %s100_s0 = scalar_lea.vmem %s55_s18, 256  ;;  %p105_p6 = scmp.lt.s32.totalorder %s55_s18, %s55_s18 }
  0x11   :  { %v66_v5 = vmul.f32 -1.442695, %v31_v3  ;;  %v67_v6 = vmul.f32 -1.442695, %v32_v4  ;;  %p101_p5 = scmp.ne.s32.totalorder %s55_s18, %s100_s0  ;;  %p106_p7 = scmp.lt.s32.totalorder %s100_s0, %s100_s0 }
  0x13   :  { %72 = vpow2.f32 %v66_v5  ;;  %p107_p8 = por %p106_p7, %p105_p6 }
  0x14   :  { %74 = vpow2.f32 %v67_v6 }
  0x15   :  { %p108_p9 = pnand %p107_p8, %p101_p5 }
  0x20   :  { %v73_v7 = vpop.eup %72 }
  0x21   :  { %v75_v8 = vpop.eup %74  ;;  %v39_v9 = vadd.f32 1.0, %v73_v7 }
  0x22   :  { %v40_v10 = vadd.f32 1.0, %v75_v8 }
  0x23   :  { %76 = vrcp.f32 %v39_v9 }
  0x24   :  { %78 = vrcp.f32 %v40_v10 }
  0x30   :  { %v77_v11 = vpop.eup %76 }
  0x31   :  { %v79_v12 = vpop.eup %78  ;;  %v45_v13 = vmul.f32 %v77_v11, %v28_v1 }
  0x32   :  { %v46_v14 = vmul.f32 %v79_v12, %v29_v2 }
  0x33   :  { %47 = vst [vmem:[#allocation6] sm:$0xff] %v45_v13 }
  0x34   :  { %48 = vst [vmem:[#allocation6 + $0x8] sm:$0xff] %v46_v14 }
  0x35   :  { %111 = shalt.err (!%p108_p9)
}
  0x36   :  { %60 = dma.vmem_to_hbm [thread:$0]  %s55_s18, 256, %s160_s2, [#allocation5], %s125_s12, %s125_s12, %s126_s13  }
  0x37   :  { %122 = dma.done.wait [#allocation5], 256  }
  0x38   :  { %123 = vsyncadd [#allocation5], 4294967040 }
  0x39   :  { %64 = vsyncpa [#allocation4], 1 }
  0x3a   :  { %65 = vsyncpa [#allocation5], 1 }

</bundles_post_ra>
